<compile_context>
chip_gen: v7x
topology: tpu7x:2x2x1
jax: 0.10.0
libtpu: 0.0.40
codegen_flags: <defaults>
</compile_context>

<pallas_src>
import functools

import jax
import jax.numpy as jnp
import numpy as np
from jax import lax
from jax.experimental import pallas as pl
from jax.experimental.pallas import tpu as pltpu

LANE = 128                      # TPU lane width
NSTATS = 8                      # padded to a full 8-sublane tile
S_GT, S_X, S_XGT, S_POS, S_NEG, S_TP0, S_PP0, S_GP0 = range(NSTATS)
# 0: sum(gt)                       4: sum((1-gt)*softplus(pred))   (BCE neg term, direct)
# 1: sum(pred)                     5: sum(pred>0 & gt==1)  [batch 0 only]
# 2: sum(pred*gt)                  6: sum(pred>0)          [batch 0 only]
# 3: sum(gt*softplus(-pred))       7: sum(gt)              [batch 0 only]

_TARGET_BLOCK_BYTES = 2 << 20   # ~2 MiB of streamed input per grid step (HBM-roofline knee)


def _sublane_align(dtype) -> int:
    """Sublane multiple that keeps packed sub-32-bit layouts unmasked."""
    return max(8, 32 // jnp.dtype(dtype).itemsize)


def _pick_block_rows(total_rows: int, pred_dtype, gt_dtype) -> int:
    """Rows (of 128 lanes) per grid step: dtype-aligned, ~2 MiB of input, VMEM-safe."""
    align = max(_sublane_align(pred_dtype), _sublane_align(gt_dtype))
    bytes_per_row = LANE * (jnp.dtype(pred_dtype).itemsize + jnp.dtype(gt_dtype).itemsize)
    target = max(align, (_TARGET_BLOCK_BYTES // bytes_per_row) // align * align)
    if total_rows <= target:
        if total_rows < align or total_rows % align == 0:
            return total_rows                    # full-extent block (always legal)
        return (total_rows // align) * align     # ragged tail handled by in-kernel mask
    return target


def _stats_kernel(pred_ref, gt_ref, out_ref, acc_ref, *, block_rows, rows_total,
                  rows_batch0, blocks_total, blocks_per_split, needs_tail_mask,
                  has_phantom_blocks):
    c = pl.program_id(0)            # reduction split ("parallel": megacore split on v7x)
    i = pl.program_id(1)            # block index within the split ("arbitrary")
    gblk = c * blocks_per_split + i  # global block index

    def fold(v):                    # (block_rows, LANE) -> (<=8, LANE); pure vreg adds
        if block_rows > 8 and block_rows % 8 == 0:
            return v.reshape(block_rows // 8, 8, LANE).sum(axis=0)
        return v

    @pl.when(i == 0)
    def _init():
        acc_ref[...] = jnp.zeros_like(acc_ref)

    def accumulate():
        x = pred_ref[...].astype(jnp.float32)      # (block_rows, LANE)
        y = gt_ref[...].astype(jnp.float32)

        if needs_tail_mask:
            rows = gblk * block_rows + lax.broadcasted_iota(
                jnp.int32, (block_rows, LANE), 0)
            valid = rows < rows_total
            x = jnp.where(valid, x, 0.0)            # select (not mul) so garbage inf/NaN
            y = jnp.where(valid, y, 0.0)            # in the ragged tail cannot propagate
            one = valid.astype(jnp.float32)
        else:
            rows = None
            one = 1.0

        # softplus(x) and softplus(-x) share the single exp/log1p (one EUP pair/element)
        t = jnp.log1p(jnp.exp(-jnp.abs(x)))
        sp_neg = jnp.maximum(-x, 0.0) + t           # softplus(-x)
        sp_pos = jnp.maximum(x, 0.0) + t            # softplus(x)

        acc_ref[S_GT] += fold(y)
        acc_ref[S_X] += fold(x)
        acc_ref[S_XGT] += fold(x * y)
        acc_ref[S_POS] += fold(y * sp_neg)          # gt * softplus(-x)
        acc_ref[S_NEG] += fold((one - y) * sp_pos)  # (1-gt) * softplus(x), accumulated directly

        # precision/recall stats use batch element 0 only (flattened rows [0, rows_batch0))
        @pl.when(gblk * block_rows < rows_batch0)
        def _batch0():
            r0 = rows if rows is not None else gblk * block_rows + lax.broadcasted_iota(
                jnp.int32, (block_rows, LANE), 0)
            m0 = (r0 < rows_batch0).astype(jnp.float32)
            pred_pos = (x > 0.0).astype(jnp.float32) * m0
            acc_ref[S_TP0] += fold(pred_pos * y)
            acc_ref[S_PP0] += fold(pred_pos)
            acc_ref[S_GP0] += fold(y * m0)

    if has_phantom_blocks:
        # odd block count split across 2 cores: last block of split 1 is a clamped re-read
        pl.when(gblk < blocks_total)(accumulate)
    else:
        accumulate()

    @pl.when(i == pl.num_programs(1) - 1)
    def _finalize():
        out_ref[0] = acc_ref[...]


@functools.partial(jax.jit, static_argnames=("balanced",))
def classification_loss(pred, gt, balanced=True):
    """JAX/Pallas equivalent of ClassificationLoss.forward(pred, gt) (weight=None)."""
    bs, num_corr = pred.shape
    assert gt.shape == (bs, num_corr)
    assert num_corr % LANE == 0, "num_corr must be a multiple of 128"
    # TODO(synk): the `weight is not None` branch of the PyTorch forward is not exposed.

    rows_batch0 = num_corr // LANE
    rows_total = bs * rows_batch0

    # free views (row-major split of the last dim); native dtype streamed, cast in-kernel
    pred2 = pred.reshape(rows_total, LANE)
    gt2 = gt.reshape(rows_total, LANE)

    block_rows = _pick_block_rows(rows_total, pred.dtype, gt.dtype)
    blocks_total = -(-rows_total // block_rows)
    nsplit = 2 if blocks_total >= 2 else 1
    blocks_per_split = -(-blocks_total // nsplit)
    has_phantom = nsplit * blocks_per_split != blocks_total
    needs_tail = blocks_total * block_rows != rows_total
    fold_rows = 8 if (block_rows % 8 == 0 and block_rows >= 8) else block_rows

    kernel = functools.partial(
        _stats_kernel,
        block_rows=block_rows, rows_total=rows_total, rows_batch0=rows_batch0,
        blocks_total=blocks_total, blocks_per_split=blocks_per_split,
        needs_tail_mask=needs_tail, has_phantom_blocks=has_phantom)

    def in_map(c, i):
        return (jnp.minimum(c * blocks_per_split + i, blocks_total - 1), 0)

    partials = pl.pallas_call(
        kernel,
        out_shape=jax.ShapeDtypeStruct((nsplit, NSTATS, fold_rows, LANE), jnp.float32),
        grid_spec=pltpu.PrefetchScalarGridSpec(
            num_scalar_prefetch=0,
            grid=(nsplit, blocks_per_split),
            in_specs=[
                pl.BlockSpec((block_rows, LANE), in_map),
                pl.BlockSpec((block_rows, LANE), in_map),
            ],
            out_specs=pl.BlockSpec((1, NSTATS, fold_rows, LANE),
                                   lambda c, i: (c, 0, 0, 0)),
            scratch_shapes=[pltpu.VMEM((NSTATS, fold_rows, LANE), jnp.float32)],
        ),
        compiler_params=pltpu.CompilerParams(
            dimension_semantics=("parallel", "arbitrary"),
        ),
    )(pred2, gt2)

    tot = jnp.sum(partials, axis=(0, 2, 3))          # (NSTATS,) global sums

    sum_gt, sum_x, sum_xgt = tot[S_GT], tot[S_X], tot[S_XGT]
    s_pos, s_neg = tot[S_POS], tot[S_NEG]
    tp0, pp0, gp0 = tot[S_TP0], tot[S_PP0], tot[S_GP0]

    total = jnp.float32(bs * num_corr)
    num_pos = jax.nn.relu(sum_gt - 1.0) + 1.0
    num_neg = jax.nn.relu((total - sum_gt) - 1.0) + 1.0
    pos_weight = num_neg / num_pos if balanced else jnp.float32(1.0)

    # BCEWithLogits mean: pos term gt*softplus(-x) weighted, neg term (1-gt)*softplus(x)
    loss = (pos_weight * s_pos + s_neg) / total

    # precision / recall / f1 on batch element 0 (sklearn zero_division=0 semantics)
    precision = jnp.where(pp0 > 0, tp0 / jnp.maximum(pp0, 1.0), 0.0)
    recall = jnp.where(gp0 > 0, tp0 / jnp.maximum(gp0, 1.0), 0.0)
    pr_sum = precision + recall
    f1 = jnp.where(pr_sum > 0, 2.0 * precision * recall / jnp.maximum(pr_sum, 1e-30), 0.0)

    logit_true = sum_xgt / jnp.maximum(1.0, sum_gt)
    logit_false = (sum_x - sum_xgt) / jnp.maximum(1.0, total - sum_gt)

    return {
        "loss": loss,
        "precision": precision,
        "recall": recall,
        "f1": f1,
        "logit_true": logit_true,
        "logit_false": logit_false,
    }


def _reference_numpy(pred, gt, balanced=True):
    """Pure-numpy reference mirroring the PyTorch module (weight=None)."""
    pred = np.asarray(pred, np.float64)
    gt = np.asarray(gt, np.float64)
    total = pred.size
    num_pos = max(gt.sum() - 1.0, 0.0) + 1.0
    num_neg = max((1.0 - gt).sum() - 1.0, 0.0) + 1.0
    pw = num_neg / num_pos if balanced else 1.0
    sp_negx = np.maximum(-pred, 0.0) + np.log1p(np.exp(-np.abs(pred)))
    sp_posx = np.maximum(pred, 0.0) + np.log1p(np.exp(-np.abs(pred)))
    loss = (pw * gt * sp_negx + (1.0 - gt) * sp_posx).mean()
    pl0 = pred[0] > 0
    tp = float(np.sum(pl0 * gt[0]))
    pp = float(np.sum(pl0))
    gp = float(np.sum(gt[0]))
    precision = tp / pp if pp > 0 else 0.0
    recall = tp / gp if gp > 0 else 0.0
    f1 = 2 * precision * recall / (precision + recall) if (precision + recall) > 0 else 0.0
    lt = np.sum(pred * gt) / max(1.0, gt.sum())
    lf = np.sum(pred * (1.0 - gt)) / max(1.0, (1.0 - gt).sum())
    return dict(loss=loss, precision=precision, recall=recall, f1=f1,
                logit_true=lt, logit_false=lf)


if __name__ == "__main__":
    key = jax.random.PRNGKey(0)
    k1, k2 = jax.random.split(key)
    bs, num_corr = 2, 2048
    pred = jax.random.normal(k1, (bs, num_corr), dtype=jnp.float32)
    gt = (jax.random.uniform(k2, (bs, num_corr)) > 0.5).astype(jnp.float32)

    out = classification_loss(pred, gt, balanced=True)
    jax.block_until_ready(out)

    ref = _reference_numpy(np.asarray(pred), np.asarray(gt), balanced=True)
    for name in ("loss", "precision", "recall", "f1", "logit_true", "logit_false"):
        np.testing.assert_allclose(float(out[name]), ref[name], rtol=1e-4, atol=1e-5)

    print("KERNEL_OK")
</pallas_src>

<mosaic_0001>
module attributes {stable_mosaic.version = 11 : i64} {
  func.func @_stats_kernel(%arg0: i32, %arg1: i32, %arg2: memref<32x128xf32, #tpu.memory_space<vmem>>, %arg3: memref<32x128xf32, #tpu.memory_space<vmem>>, %arg4: memref<1x8x8x128xf32, #tpu.memory_space<vmem>>, %arg5: memref<8x8x128xf32, #tpu.memory_space<vmem>>) attributes {dimension_semantics = [#tpu.dimension_semantics<parallel>, #tpu.dimension_semantics<arbitrary>], iteration_bounds = array<i64: 1, 1>, scalar_prefetch = 0 : i64, scratch_operands = 1 : i64, tpu.core_type = #tpu.core_type<tc>, window_params = [{transform_indices = @transform_0, window_bounds = array<i64: 32, 128>}, {transform_indices = @transform_1, window_bounds = array<i64: 32, 128>}, {transform_indices = @transform_2, window_bounds = array<i64: 1, 8, 8, 128>}]} {
    %c1_i32 = arith.constant 1 : i32
    %0 = arith.muli %arg0, %c1_i32 : i32
    %1 = arith.addi %0, %arg1 : i32
    %c0_i32 = arith.constant 0 : i32
    %2 = arith.cmpi eq, %arg1, %c0_i32 : i32
    %3 = arith.extui %2 : i1 to i32
    %c0_i32_0 = arith.constant 0 : i32
    %4 = arith.cmpi ne, %3, %c0_i32_0 : i32
    scf.if %4 {
      %cst_42 = arith.constant 0.000000e+00 : f32
      %72 = vector.broadcast %cst_42 : f32 to vector<8x8x128xf32>
      %c0_43 = arith.constant 0 : index
      %c0_44 = arith.constant 0 : index
      %c0_45 = arith.constant 0 : index
      %73 = vector.load %arg5[%c0_43, %c0_44, %c0_45] : memref<8x8x128xf32, #tpu.memory_space<vmem>>, vector<8x8x128xf32>
      tpu.vector_store %arg5[%c0_43, %c0_44, %c0_45], %72 {strides = array<i32>} : memref<8x8x128xf32, #tpu.memory_space<vmem>>, vector<8x8x128xf32>,
    } else {
    }
    %c0 = arith.constant 0 : index
    %c0_1 = arith.constant 0 : index
    %5 = vector.load %arg2[%c0, %c0_1] : memref<32x128xf32, #tpu.memory_space<vmem>>, vector<32x128xf32>
    %c0_2 = arith.constant 0 : index
    %c0_3 = arith.constant 0 : index
    %6 = vector.load %arg3[%c0_2, %c0_3] : memref<32x128xf32, #tpu.memory_space<vmem>>, vector<32x128xf32>
    %7 = math.absf %5 : vector<32x128xf32>
    %cst = arith.constant 0.000000e+00 : f32
    %8 = vector.broadcast %cst : f32 to vector<32x128xf32>
    %9 = arith.subf %8, %7 : vector<32x128xf32>
    %10 = math.exp %9 : vector<32x128xf32>
    %11 = math.log1p %10 : vector<32x128xf32>
    %cst_4 = arith.constant 0.000000e+00 : f32
    %12 = vector.broadcast %cst_4 : f32 to vector<32x128xf32>
    %13 = arith.subf %12, %5 : vector<32x128xf32>
    %cst_5 = arith.constant 0.000000e+00 : f32
    %14 = vector.broadcast %cst_5 : f32 to vector<32x128xf32>
    %15 = arith.maximumf %13, %14 : vector<32x128xf32>
    %16 = arith.addf %15, %11 : vector<32x128xf32>
    %cst_6 = arith.constant 0.000000e+00 : f32
    %17 = vector.broadcast %cst_6 : f32 to vector<32x128xf32>
    %18 = arith.maximumf %5, %17 : vector<32x128xf32>
    %19 = arith.addf %18, %11 : vector<32x128xf32>
    %c0_7 = arith.constant 0 : index
    %c0_8 = arith.constant 0 : index
    %c0_9 = arith.constant 0 : index
    %20 = vector.load %arg5[%c0_7, %c0_8, %c0_9] : memref<8x8x128xf32, #tpu.memory_space<vmem>>, vector<1x8x128xf32>
    %21 = vector.shape_cast %20 : vector<1x8x128xf32> to vector<8x128xf32>
    %22 = vector.shape_cast %6 : vector<32x128xf32> to vector<4x8x128xf32>
    %cst_10 = arith.constant dense<0.000000e+00> : vector<8x128xf32>
    %23 = vector.multi_reduction <add>, %22, %cst_10 [0] : vector<4x8x128xf32> to vector<8x128xf32>
    %24 = arith.addf %21, %23 : vector<8x128xf32>
    %c0_11 = arith.constant 0 : index
    %c0_12 = arith.constant 0 : index
    %c0_13 = arith.constant 0 : index
    %25 = vector.load %arg5[%c0_11, %c0_12, %c0_13] : memref<8x8x128xf32, #tpu.memory_space<vmem>>, vector<1x8x128xf32>
    %26 = vector.shape_cast %25 : vector<1x8x128xf32> to vector<8x128xf32>
    %27 = vector.shape_cast %24 : vector<8x128xf32> to vector<1x8x128xf32>
    tpu.vector_store %arg5[%c0_11, %c0_12, %c0_13], %27 {strides = array<i32>} : memref<8x8x128xf32, #tpu.memory_space<vmem>>, vector<1x8x128xf32>,
    %c1 = arith.constant 1 : index
    %c0_14 = arith.constant 0 : index
    %c0_15 = arith.constant 0 : index
    %28 = vector.load %arg5[%c1, %c0_14, %c0_15] : memref<8x8x128xf32, #tpu.memory_space<vmem>>, vector<1x8x128xf32>
    %29 = vector.shape_cast %28 : vector<1x8x128xf32> to vector<8x128xf32>
    %30 = vector.shape_cast %5 : vector<32x128xf32> to vector<4x8x128xf32>
    %cst_16 = arith.constant dense<0.000000e+00> : vector<8x128xf32>
    %31 = vector.multi_reduction <add>, %30, %cst_16 [0] : vector<4x8x128xf32> to vector<8x128xf32>
    %32 = arith.addf %29, %31 : vector<8x128xf32>
    %c1_17 = arith.constant 1 : index
    %c0_18 = arith.constant 0 : index
    %c0_19 = arith.constant 0 : index
    %33 = vector.load %arg5[%c1_17, %c0_18, %c0_19] : memref<8x8x128xf32, #tpu.memory_space<vmem>>, vector<1x8x128xf32>
    %34 = vector.shape_cast %33 : vector<1x8x128xf32> to vector<8x128xf32>
    %35 = vector.shape_cast %32 : vector<8x128xf32> to vector<1x8x128xf32>
    tpu.vector_store %arg5[%c1_17, %c0_18, %c0_19], %35 {strides = array<i32>} : memref<8x8x128xf32, #tpu.memory_space<vmem>>, vector<1x8x128xf32>,
    %c2 = arith.constant 2 : index
    %c0_20 = arith.constant 0 : index
    %c0_21 = arith.constant 0 : index
    %36 = vector.load %arg5[%c2, %c0_20, %c0_21] : memref<8x8x128xf32, #tpu.memory_space<vmem>>, vector<1x8x128xf32>
    %37 = vector.shape_cast %36 : vector<1x8x128xf32> to vector<8x128xf32>
    %38 = arith.mulf %5, %6 : vector<32x128xf32>
    %39 = vector.shape_cast %38 : vector<32x128xf32> to vector<4x8x128xf32>
    %cst_22 = arith.constant dense<0.000000e+00> : vector<8x128xf32>
    %40 = vector.multi_reduction <add>, %39, %cst_22 [0] : vector<4x8x128xf32> to vector<8x128xf32>
    %41 = arith.addf %37, %40 : vector<8x128xf32>
    %c2_23 = arith.constant 2 : index
    %c0_24 = arith.constant 0 : index
    %c0_25 = arith.constant 0 : index
    %42 = vector.load %arg5[%c2_23, %c0_24, %c0_25] : memref<8x8x128xf32, #tpu.memory_space<vmem>>, vector<1x8x128xf32>
    %43 = vector.shape_cast %42 : vector<1x8x128xf32> to vector<8x128xf32>
    %44 = vector.shape_cast %41 : vector<8x128xf32> to vector<1x8x128xf32>
    tpu.vector_store %arg5[%c2_23, %c0_24, %c0_25], %44 {strides = array<i32>} : memref<8x8x128xf32, #tpu.memory_space<vmem>>, vector<1x8x128xf32>,
    %c3 = arith.constant 3 : index
    %c0_26 = arith.constant 0 : index
    %c0_27 = arith.constant 0 : index
    %45 = vector.load %arg5[%c3, %c0_26, %c0_27] : memref<8x8x128xf32, #tpu.memory_space<vmem>>, vector<1x8x128xf32>
    %46 = vector.shape_cast %45 : vector<1x8x128xf32> to vector<8x128xf32>
    %47 = arith.mulf %6, %16 : vector<32x128xf32>
    %48 = vector.shape_cast %47 : vector<32x128xf32> to vector<4x8x128xf32>
    %cst_28 = arith.constant dense<0.000000e+00> : vector<8x128xf32>
    %49 = vector.multi_reduction <add>, %48, %cst_28 [0] : vector<4x8x128xf32> to vector<8x128xf32>
    %50 = arith.addf %46, %49 : vector<8x128xf32>
    %c3_29 = arith.constant 3 : index
    %c0_30 = arith.constant 0 : index
    %c0_31 = arith.constant 0 : index
    %51 = vector.load %arg5[%c3_29, %c0_30, %c0_31] : memref<8x8x128xf32, #tpu.memory_space<vmem>>, vector<1x8x128xf32>
    %52 = vector.shape_cast %51 : vector<1x8x128xf32> to vector<8x128xf32>
    %53 = vector.shape_cast %50 : vector<8x128xf32> to vector<1x8x128xf32>
    tpu.vector_store %arg5[%c3_29, %c0_30, %c0_31], %53 {strides = array<i32>} : memref<8x8x128xf32, #tpu.memory_space<vmem>>, vector<1x8x128xf32>,
    %c4 = arith.constant 4 : index
    %c0_32 = arith.constant 0 : index
    %c0_33 = arith.constant 0 : index
    %54 = vector.load %arg5[%c4, %c0_32, %c0_33] : memref<8x8x128xf32, #tpu.memory_space<vmem>>, vector<1x8x128xf32>
    %55 = vector.shape_cast %54 : vector<1x8x128xf32> to vector<8x128xf32>
    %cst_34 = arith.constant 1.000000e+00 : f32
    %56 = vector.broadcast %cst_34 : f32 to vector<32x128xf32>
    %57 = arith.subf %56, %6 : vector<32x128xf32>
    %58 = arith.mulf %57, %19 : vector<32x128xf32>
    %59 = vector.shape_cast %58 : vector<32x128xf32> to vector<4x8x128xf32>
    %cst_35 = arith.constant dense<0.000000e+00> : vector<8x128xf32>
    %60 = vector.multi_reduction <add>, %59, %cst_35 [0] : vector<4x8x128xf32> to vector<8x128xf32>
    %61 = arith.addf %55, %60 : vector<8x128xf32>
    %c4_36 = arith.constant 4 : index
    %c0_37 = arith.constant 0 : index
    %c0_38 = arith.constant 0 : index
    %62 = vector.load %arg5[%c4_36, %c0_37, %c0_38] : memref<8x8x128xf32, #tpu.memory_space<vmem>>, vector<1x8x128xf32>
    %63 = vector.shape_cast %62 : vector<1x8x128xf32> to vector<8x128xf32>
    %64 = vector.shape_cast %61 : vector<8x128xf32> to vector<1x8x128xf32>
    tpu.vector_store %arg5[%c4_36, %c0_37, %c0_38], %64 {strides = array<i32>} : memref<8x8x128xf32, #tpu.memory_space<vmem>>, vector<1x8x128xf32>,
    %c32_i32 = arith.constant 32 : i32
    %65 = arith.muli %1, %c32_i32 : i32
    %c16_i32 = arith.constant 16 : i32
    %66 = arith.cmpi slt, %65, %c16_i32 : i32
    %67 = arith.extui %66 : i1 to i32
    %c0_i32_39 = arith.constant 0 : i32
    %68 = arith.cmpi ne, %67, %c0_i32_39 : i32
    scf.if %68 {
      %c32_i32_42 = arith.constant 32 : i32
      %72 = arith.muli %1, %c32_i32_42 : i32
      %73 = tpu.iota {dimensions = array<i32: 0>} : vector<32x128xi32>
      %74 = vector.broadcast %72 : i32 to vector<32x128xi32>
      %75 = arith.addi %74, %73 : vector<32x128xi32>
      %c16_i32_43 = arith.constant 16 : i32
      %76 = vector.broadcast %c16_i32_43 : i32 to vector<32x128xi32>
      %77 = arith.cmpi slt, %75, %76 : vector<32x128xi32>
      %78 = arith.extui %77 : vector<32x128xi1> to vector<32x128xi32>
      %79 = arith.sitofp %78 : vector<32x128xi32> to vector<32x128xf32>
      %cst_44 = arith.constant 0.000000e+00 : f32
      %80 = vector.broadcast %cst_44 : f32 to vector<32x128xf32>
      %81 = arith.cmpf ogt, %5, %80 : vector<32x128xf32>
      %82 = arith.extui %81 : vector<32x128xi1> to vector<32x128xi32>
      %83 = arith.sitofp %82 : vector<32x128xi32> to vector<32x128xf32>
      %84 = arith.mulf %83, %79 : vector<32x128xf32>
      %c5 = arith.constant 5 : index
      %c0_45 = arith.constant 0 : index
      %c0_46 = arith.constant 0 : index
      %85 = vector.load %arg5[%c5, %c0_45, %c0_46] : memref<8x8x128xf32, #tpu.memory_space<vmem>>, vector<1x8x128xf32>
      %86 = vector.shape_cast %85 : vector<1x8x128xf32> to vector<8x128xf32>
      %87 = arith.mulf %84, %6 : vector<32x128xf32>
      %88 = vector.shape_cast %87 : vector<32x128xf32> to vector<4x8x128xf32>
      %cst_47 = arith.constant dense<0.000000e+00> : vector<8x128xf32>
      %89 = vector.multi_reduction <add>, %88, %cst_47 [0] : vector<4x8x128xf32> to vector<8x128xf32>
      %90 = arith.addf %86, %89 : vector<8x128xf32>
      %c5_48 = arith.constant 5 : index
      %c0_49 = arith.constant 0 : index
      %c0_50 = arith.constant 0 : index
      %91 = vector.load %arg5[%c5_48, %c0_49, %c0_50] : memref<8x8x128xf32, #tpu.memory_space<vmem>>, vector<1x8x128xf32>
      %92 = vector.shape_cast %91 : vector<1x8x128xf32> to vector<8x128xf32>
      %93 = vector.shape_cast %90 : vector<8x128xf32> to vector<1x8x128xf32>
      tpu.vector_store %arg5[%c5_48, %c0_49, %c0_50], %93 {strides = array<i32>} : memref<8x8x128xf32, #tpu.memory_space<vmem>>, vector<1x8x128xf32>,
      %c6 = arith.constant 6 : index
      %c0_51 = arith.constant 0 : index
      %c0_52 = arith.constant 0 : index
      %94 = vector.load %arg5[%c6, %c0_51, %c0_52] : memref<8x8x128xf32, #tpu.memory_space<vmem>>, vector<1x8x128xf32>
      %95 = vector.shape_cast %94 : vector<1x8x128xf32> to vector<8x128xf32>
      %96 = vector.shape_cast %84 : vector<32x128xf32> to vector<4x8x128xf32>
      %cst_53 = arith.constant dense<0.000000e+00> : vector<8x128xf32>
      %97 = vector.multi_reduction <add>, %96, %cst_53 [0] : vector<4x8x128xf32> to vector<8x128xf32>
      %98 = arith.addf %95, %97 : vector<8x128xf32>
      %c6_54 = arith.constant 6 : index
      %c0_55 = arith.constant 0 : index
      %c0_56 = arith.constant 0 : index
      %99 = vector.load %arg5[%c6_54, %c0_55, %c0_56] : memref<8x8x128xf32, #tpu.memory_space<vmem>>, vector<1x8x128xf32>
      %100 = vector.shape_cast %99 : vector<1x8x128xf32> to vector<8x128xf32>
      %101 = vector.shape_cast %98 : vector<8x128xf32> to vector<1x8x128xf32>
      tpu.vector_store %arg5[%c6_54, %c0_55, %c0_56], %101 {strides = array<i32>} : memref<8x8x128xf32, #tpu.memory_space<vmem>>, vector<1x8x128xf32>,
      %c7 = arith.constant 7 : index
      %c0_57 = arith.constant 0 : index
      %c0_58 = arith.constant 0 : index
      %102 = vector.load %arg5[%c7, %c0_57, %c0_58] : memref<8x8x128xf32, #tpu.memory_space<vmem>>, vector<1x8x128xf32>
      %103 = vector.shape_cast %102 : vector<1x8x128xf32> to vector<8x128xf32>
      %104 = arith.mulf %6, %79 : vector<32x128xf32>
      %105 = vector.shape_cast %104 : vector<32x128xf32> to vector<4x8x128xf32>
      %cst_59 = arith.constant dense<0.000000e+00> : vector<8x128xf32>
      %106 = vector.multi_reduction <add>, %105, %cst_59 [0] : vector<4x8x128xf32> to vector<8x128xf32>
      %107 = arith.addf %103, %106 : vector<8x128xf32>
      %c7_60 = arith.constant 7 : index
      %c0_61 = arith.constant 0 : index
      %c0_62 = arith.constant 0 : index
      %108 = vector.load %arg5[%c7_60, %c0_61, %c0_62] : memref<8x8x128xf32, #tpu.memory_space<vmem>>, vector<1x8x128xf32>
      %109 = vector.shape_cast %108 : vector<1x8x128xf32> to vector<8x128xf32>
      %110 = vector.shape_cast %107 : vector<8x128xf32> to vector<1x8x128xf32>
      tpu.vector_store %arg5[%c7_60, %c0_61, %c0_62], %110 {strides = array<i32>} : memref<8x8x128xf32, #tpu.memory_space<vmem>>, vector<1x8x128xf32>,
    } else {
    }
    %c0_i32_40 = arith.constant 0 : i32
    %69 = arith.cmpi eq, %arg1, %c0_i32_40 : i32
    %70 = arith.extui %69 : i1 to i32
    %c0_i32_41 = arith.constant 0 : i32
    %71 = arith.cmpi ne, %70, %c0_i32_41 : i32
    scf.if %71 {
      %c0_42 = arith.constant 0 : index
      %c0_43 = arith.constant 0 : index
      %c0_44 = arith.constant 0 : index
      %72 = vector.load %arg5[%c0_42, %c0_43, %c0_44] : memref<8x8x128xf32, #tpu.memory_space<vmem>>, vector<8x8x128xf32>
      %c0_45 = arith.constant 0 : index
      %c0_46 = arith.constant 0 : index
      %c0_47 = arith.constant 0 : index
      %c0_48 = arith.constant 0 : index
      %73 = vector.load %arg4[%c0_45, %c0_46, %c0_47, %c0_48] : memref<1x8x8x128xf32, #tpu.memory_space<vmem>>, vector<1x8x8x128xf32>
      %74 = vector.shape_cast %73 : vector<1x8x8x128xf32> to vector<8x8x128xf32>
      %75 = vector.shape_cast %72 : vector<8x8x128xf32> to vector<1x8x8x128xf32>
      tpu.vector_store %arg4[%c0_45, %c0_46, %c0_47, %c0_48], %75 {strides = array<i32>} : memref<1x8x8x128xf32, #tpu.memory_space<vmem>>, vector<1x8x8x128xf32>,
    } else {
    }
    return
  }
  func.func @transform_0(%arg0: i32, %arg1: i32) -> (i32, i32) {
    %c1_i32 = arith.constant 1 : i32
    %0 = arith.muli %arg0, %c1_i32 : i32
    %1 = arith.addi %0, %arg1 : i32
    %c0_i32 = arith.constant 0 : i32
    %2 = arith.minsi %1, %c0_i32 : i32
    %c0_i32_0 = arith.constant 0 : i32
    %c0_i32_1 = arith.constant 0 : i32
    return %2, %c0_i32_0 : i32, i32
  }
  func.func @transform_1(%arg0: i32, %arg1: i32) -> (i32, i32) {
    %c1_i32 = arith.constant 1 : i32
    %0 = arith.muli %arg0, %c1_i32 : i32
    %1 = arith.addi %0, %arg1 : i32
    %c0_i32 = arith.constant 0 : i32
    %2 = arith.minsi %1, %c0_i32 : i32
    %c0_i32_0 = arith.constant 0 : i32
    %c0_i32_1 = arith.constant 0 : i32
    return %2, %c0_i32_0 : i32, i32
  }
  func.func @transform_2(%arg0: i32, %arg1: i32) -> (i32, i32, i32, i32) {
    %c0_i32 = arith.constant 0 : i32
    %c0_i32_0 = arith.constant 0 : i32
    %c0_i32_1 = arith.constant 0 : i32
    %c0_i32_2 = arith.constant 0 : i32
    return %arg0, %c0_i32, %c0_i32_0, %c0_i32_1 : i32, i32, i32, i32
  }
}

</mosaic_0001>

<bundles_post_ra>
// kernel: classification_loss.1
= control target key start
LH: loop header
LB: loop body
LE: loop exit
PB: predicated region body
PF: predicated region fallthrough
CT: control target
= control target key end

     0   :  { %v346_v33 = vmov 0.0   ;;  %s476_s1 = inlined_call_operand.vmem [shape: f32[32,128], index: 1, kind: input, shape index: {}]   ;;  %s477_s0 = inlined_call_operand.vmem [shape: f32[32,128], index: 0, kind: input, shape index: {}]   ;;  %s478_s2 = inlined_call_operand.vmem [shape: f32[1,8,8,128], index: 2, kind: output, shape index: {}]  }
   0x1   :  { %v365_v0 = vld [vmem:[%s476_s1] sm:$0xff]  ;;  %v370_v1 = vld [vmem:[%s476_s1 + $0x8] sm:$0xff]  ;;  %v375_v2 = vld [vmem:[%s476_s1 + $0x10] sm:$0xff] }
   0x2   :  { %v379_v3 = vadd.f32 %v370_v1, %v365_v0  ;;  %v384_v4 = vld [vmem:[%s477_s0] sm:$0xff]  ;;  %v389_v5 = vld [vmem:[%s477_s0 + $0x8] sm:$0xff]  ;;  %v394_v6 = vld [vmem:[%s477_s0 + $0x10] sm:$0xff]  ;;  %v283_v47 = vmul.f32 0.0, %v375_v2 }
   0x3   :  { %v399_v7 = vld [vmem:[%s477_s0 + $0x18] sm:$0xff]  ;;  %v96_v8 = vand.u32 2147483647, %v384_v4  ;;  %v97_v9 = vand.u32 2147483647, %v389_v5  ;;  %v176_v10 = vadd.f32 %v389_v5, %v384_v4  ;;  %v183_v11 = vmul.f32 %v365_v0, %v384_v4 }
   0x4   :  { %v170_v12 = vadd.f32 %v379_v3, %v375_v2  ;;  %v98_v13 = vand.u32 2147483647, %v394_v6  ;;  %v99_v14 = vand.u32 2147483647, %v399_v7  ;;  %v184_v15 = vmul.f32 %v370_v1, %v389_v5  ;;  %v416_v16 = vld [vmem:[%s476_s1 + $0x18] sm:$0xff] }
   0x5   :  { %v100_v17 = vsub.f32 0.0, %v96_v8  ;;  %v101_v18 = vsub.f32 0.0, %v97_v9  ;;  %v177_v19 = vadd.f32 %v176_v10, %v394_v6  ;;  %v185_v20 = vmul.f32 %v375_v2, %v394_v6 }
   0x6   :  { %v171_v21 = vadd.f32 %v170_v12, %v416_v16  ;;  %v102_v22 = vsub.f32 0.0, %v98_v13  ;;  %v103_v23 = vsub.f32 0.0, %v99_v14  ;;  %v186_v24 = vmul.f32 %v416_v16, %v399_v7 }
   0x7   :  { %v104_v25 = vmul.f32 1.442695, %v100_v17  ;;  %v106_v26 = vmul.f32 1.442695, %v101_v18  ;;  %v178_v27 = vadd.f32 %v177_v19, %v399_v7  ;;  %v187_v28 = vadd.f32 %v184_v15, %v183_v11 }
   0x8   :  { %301 = vst [vmem:[%s478_s2] sm:$0xff] %v171_v21  ;;  %v108_v29 = vmul.f32 1.442695, %v102_v22  ;;  %v110_v30 = vmul.f32 1.442695, %v103_v23  ;;  %vm245_vm0 = vcmp.gt.f32.partialorder %v384_v4, 0.0  ;;  %vm246_vm1 = vcmp.gt.f32.partialorder %v389_v5, 0.0 }
   0x9   :  { %330 = vpow2.f32 %v104_v25  ;;  %302 = vst [vmem:[%s478_s2 + $0x8] sm:$0xff] %v178_v27  ;;  %v188_v31 = vadd.f32 %v187_v28, %v185_v20  ;;  %vm247_vm2 = vcmp.gt.f32.partialorder %v394_v6, 0.0  ;;  %vm248_vm3 = vcmp.gt.f32.partialorder %v399_v7, 0.0 }
   0xa   :  { %332 = vpow2.f32 %v106_v26  ;;  %v325_v34 = vsel %vm245_vm0, 1.0, %v346_v33  ;;  %v326_v35 = vsel %vm246_vm1, 1.0, %v346_v33  ;;  %v327_v36 = vsel %vm247_vm2, 1.0, %v346_v33 }
   0xb   :  { %334 = vpow2.f32 %v108_v29  ;;  %v189_v32 = vadd.f32 %v188_v31, %v186_v24  ;;  %v328_v37 = vsel %vm248_vm3, 1.0, %v346_v33  ;;  %v259_v38 = vmul.f32 0.0, %v327_v36 }
   0xc   :  { %336 = vpow2.f32 %v110_v30  ;;  %v263_v39 = vmul.f32 %v325_v34, %v365_v0  ;;  %v264_v40 = vmul.f32 %v326_v35, %v370_v1  ;;  %v260_v41 = vmul.f32 0.0, %v328_v37 }
   0xd   :  { %303 = vst [vmem:[%s478_s2 + $0x10] sm:$0xff] %v189_v32  ;;  %v274_v42 = vadd.f32 %v326_v35, %v325_v34  ;;  %v265_v43 = vmul.f32 %v259_v38, %v375_v2  ;;  %v284_v58 = vmul.f32 0.0, %v416_v16  ;;  %v286_v59 = vadd.f32 %v283_v47, %v379_v3 }
   0xe   :  { %v267_v44 = vadd.f32 %v264_v40, %v263_v39  ;;  %v266_v45 = vmul.f32 %v260_v41, %v416_v16  ;;  %v148_v8 = vsub.f32 0.0, %v384_v4  ;;  %v149_v9 = vsub.f32 0.0, %v389_v5 }
   0xf   :  { %v275_v46 = vadd.f32 %v274_v42, %v259_v38  ;;  %v287_v10 = vadd.f32 %v286_v59, %v284_v58  ;;  %v150_v3 = vsub.f32 0.0, %v394_v6  ;;  %v151_v15 = vsub.f32 0.0, %v399_v7 }
  0x10   :  { %v268_v49 = vadd.f32 %v267_v44, %v265_v43  ;;  %v205_v19 = vsub.f32 1.0, %v365_v0  ;;  %v206_v20 = vsub.f32 1.0, %v370_v1  ;;  %v152_v22 = vmax.f32 %v148_v8, 0.0 }
  0x11   :  { %v276_v52 = vadd.f32 %v275_v46, %v260_v41  ;;  %308 = vst [vmem:[%s478_s2 + $0x38] sm:$0xff] %v287_v10  ;;  %v153_v23 = vmax.f32 %v149_v9, 0.0  ;;  %v207_v24 = vsub.f32 1.0, %v375_v2  ;;  %v154_v27 = vmax.f32 %v150_v3, 0.0 }
  0x12   :  { %v269_v55 = vadd.f32 %v268_v49, %v266_v45  ;;  %v160_v28 = vmax.f32 %v384_v4, 0.0  ;;  %v155_v32 = vmax.f32 %v151_v15, 0.0  ;;  %v161_v36 = vmax.f32 %v389_v5, 0.0 }
  0x13   :  { %v331_v48 = vpop.eup %330  ;;  %307 = vst [vmem:[%s478_s2 + $0x30] sm:$0xff] %v276_v52  ;;  %v162_v39 = vmax.f32 %v394_v6, 0.0  ;;  %v163_v40 = vmax.f32 %v399_v7, 0.0  ;;  %v208_v43 = vsub.f32 1.0, %v416_v16 }
  0x14   :  { %v333_v50 = vpop.eup %332  ;;  %v112_v51 = vadd.f32 1.0, %v331_v48  ;;  %v115_v60 = vmul.f32 -0.5, %v331_v48  ;;  %306 = vst [vmem:[%s478_s2 + $0x28] sm:$0xff] %v269_v55  ;;  %v118_v13 = vand.u32 2147483647, %v331_v48 }
  0x15   :  { %v335_v53 = vpop.eup %334  ;;  %v121_v54 = vadd.f32 1.0, %v333_v50  ;;  %v124_v61 = vmul.f32 -0.5, %v333_v50  ;;  %v127_v17 = vand.u32 2147483647, %v333_v50 }
  0x16   :  { %v337_v56 = vpop.eup %336  ;;  %338 = vlog2.f32 %v112_v51  ;;  %v130_v57 = vadd.f32 1.0, %v335_v53  ;;  %v133_v63 = vmul.f32 -0.5, %v335_v53  ;;  %v116_v11 = vadd.f32 1.0, %v115_v60 }
  0x17   :  { %340 = vlog2.f32 %v121_v54  ;;  %v139_v62 = vadd.f32 1.0, %v337_v56  ;;  %v142_v12 = vmul.f32 -0.5, %v337_v56  ;;  %v125_v14 = vadd.f32 1.0, %v124_v61 }
  0x18   :  { %342 = vlog2.f32 %v130_v57  ;;  %v134_v18 = vadd.f32 1.0, %v133_v63  ;;  %v136_v21 = vand.u32 2147483647, %v335_v53  ;;  %v117_v25 = vmul.f32 %v331_v48, %v116_v11 }
  0x19   :  { %344 = vlog2.f32 %v139_v62  ;;  %v143_v26 = vadd.f32 1.0, %v142_v12  ;;  %vm119_vm4 = vcmp.lt.f32.partialorder %v118_v13, 0.0004427343  ;;  %v126_v30 = vmul.f32 %v333_v50, %v125_v14 }
  0x1a   :  { %v145_v31 = vand.u32 2147483647, %v337_v56  ;;  %vm128_vm5 = vcmp.lt.f32.partialorder %v127_v17, 0.0004427343  ;;  %v135_v35 = vmul.f32 %v335_v53, %v134_v18  ;;  %vm137_vm6 = vcmp.lt.f32.partialorder %v136_v21, 0.0004427343 }
  0x1b   :  { %v144_v42 = vmul.f32 %v337_v56, %v143_v26 }
  0x1c   :  { %vm146_vm7 = vcmp.lt.f32.partialorder %v145_v31, 0.0004427343 }
  0x20   :  { %v339_v29 = vpop.eup %338 }
  0x21   :  { %v341_v33 = vpop.eup %340  ;;  %v114_v34 = vmul.f32 0.6931472, %v339_v29 }
  0x22   :  { %v343_v37 = vpop.eup %342  ;;  %v123_v38 = vmul.f32 0.6931472, %v341_v33 }
  0x23   :  { %v120_v41 = vsel %vm119_vm4, %v117_v25, %v114_v34  ;;  %v132_v4 = vmul.f32 0.6931472, %v343_v37  ;;  %v345_v44 = vpop.eup %344 }
  0x24   :  { %v129_v45 = vsel %vm128_vm5, %v126_v30, %v123_v38  ;;  %v156_v46 = vadd.f32 %v152_v22, %v120_v41  ;;  %v164_v47 = vadd.f32 %v160_v28, %v120_v41  ;;  %v141_v49 = vmul.f32 0.6931472, %v345_v44 }
  0x25   :  { %v138_v48 = vsel %vm137_vm6, %v135_v35, %v132_v4  ;;  %v157_v5 = vadd.f32 %v153_v23, %v129_v45  ;;  %v165_v50 = vadd.f32 %v161_v36, %v129_v45 }
  0x26   :  { %v158_v51 = vadd.f32 %v154_v27, %v138_v48  ;;  %v194_v52 = vmul.f32 %v156_v46, %v365_v0  ;;  %v166_v6 = vadd.f32 %v162_v39, %v138_v48  ;;  %v209_v53 = vmul.f32 %v205_v19, %v164_v47 }
  0x27   :  { %v147_v7 = vsel %vm146_vm7, %v144_v42, %v141_v49  ;;  %v195_v54 = vmul.f32 %v157_v5, %v370_v1  ;;  %v210_v55 = vmul.f32 %v206_v20, %v165_v50 }
  0x28   :  { %v159_v56 = vadd.f32 %v155_v32, %v147_v7  ;;  %v196_v57 = vmul.f32 %v158_v51, %v375_v2  ;;  %v167_v58 = vadd.f32 %v163_v40, %v147_v7  ;;  %v211_v59 = vmul.f32 %v207_v24, %v166_v6 }
  0x29   :  { %v198_v60 = vadd.f32 %v195_v54, %v194_v52  ;;  %v213_v61 = vadd.f32 %v210_v55, %v209_v53 }
  0x2a   :  { %v197_v62 = vmul.f32 %v159_v56, %v416_v16  ;;  %v212_v63 = vmul.f32 %v208_v43, %v167_v58 }
  0x2b   :  { %v199_v8 = vadd.f32 %v198_v60, %v196_v57  ;;  %v214_v9 = vadd.f32 %v213_v61, %v211_v59 }
  0x2d   :  { %v200_v10 = vadd.f32 %v199_v8, %v197_v62  ;;  %v215_v0 = vadd.f32 %v214_v9, %v212_v63 }
  0x2f   :  { %304 = vst [vmem:[%s478_s2 + $0x18] sm:$0xff] %v200_v10  ;;  %305 = vst [vmem:[%s478_s2 + $0x20] sm:$0xff] %v215_v0 }

</bundles_post_ra>
